<compile_context>
chip_gen: v6e
topology: v6e:2x2x1
jax: 0.10.0
libtpu: 0.0.40
codegen_flags: <defaults>
</compile_context>

<pallas_src>
import jax
import jax.numpy as jnp
from jax.experimental import pallas as pl
from jax.experimental.pallas import tpu as pltpu


def _pick_tile(dim: int, preferred: int, quantum: int) -> int:
    """Largest multiple of `quantum` that divides `dim` and is <= `preferred`.
    Falls back to the full dimension (always a legal block size)."""
    if dim <= preferred:
        return dim
    t = (preferred // quantum) * quantum
    while t >= quantum:
        if dim % t == 0:
            return t
        t -= quantum
    return dim


def _gram_tiles(M: int, K: int):
    tm = _pick_tile(M, 256, 8)     # sublane quantum for LHS rows / G rows
    tn = _pick_tile(M, 256, 128)   # lane quantum for G columns
    tk = _pick_tile(K, 512, 128)   # lane-dense contraction (K = H*W)
    return tm, tn, tk


def gram_matrix(x: jax.Array) -> jax.Array:
    """Pallas tiled Gram matrix: G = F @ F^T / (B*C*H*W), f32 output."""
    b, c, h, w = x.shape
    M, K = b * c, h * w
    f = x.reshape(M, K)                       # lane-dense flatten of the spatial dims
    scale = 1.0 / float(M * K)                # precomputed reciprocal (no in-kernel divide)
    tm, tn, tk = _gram_tiles(M, K)
    grid = (M // tm, M // tn, K // tk)

    def kernel(fi_ref, fj_ref, g_ref, acc_ref):
        @pl.when(pl.program_id(2) == 0)
        def _():
            acc_ref[...] = jnp.zeros_like(acc_ref)

        # (tm, tk) x (tn, tk) contracting on the last dims -> (tm, tn) on the MXU.
        acc_ref[...] += jax.lax.dot_general(
            fi_ref[...], fj_ref[...],
            dimension_numbers=(((1,), (1,)), ((), ())),
            preferred_element_type=jnp.float32,
        )

        @pl.when(pl.program_id(2) == pl.num_programs(2) - 1)
        def _():
            g_ref[...] = (acc_ref[...] * scale).astype(g_ref.dtype)

    return pl.pallas_call(
        kernel,
        out_shape=jax.ShapeDtypeStruct((M, M), jnp.float32),
        grid_spec=pltpu.PrefetchScalarGridSpec(
            num_scalar_prefetch=0,
            grid=grid,
            in_specs=[
                pl.BlockSpec((tm, tk), lambda i, j, k: (i, k)),
                pl.BlockSpec((tn, tk), lambda i, j, k: (j, k)),
            ],
            out_specs=pl.BlockSpec((tm, tn), lambda i, j, k: (i, j)),
            scratch_shapes=[pltpu.VMEM((tm, tn), jnp.float32)],
        ),
        compiler_params=pltpu.CompilerParams(
            dimension_semantics=("parallel", "parallel", "arbitrary"),
        ),
    )(f, f)


def style_mse_loss(x: jax.Array, target_gram: jax.Array) -> jax.Array:
    """Fused Gram + MSE: returns mean((gram_matrix(x) - target_gram)**2).
    The (M, M) Gram matrix is never written to HBM."""
    b, c, h, w = x.shape
    M, K = b * c, h * w
    f = x.reshape(M, K)
    gram_scale = 1.0 / float(M * K)
    mse_scale = 1.0 / float(M * M)
    tm, tn, tk = _gram_tiles(M, K)
    grid = (M // tm, M // tn, K // tk)

    def kernel(fi_ref, fj_ref, tgt_ref, loss_ref, acc_ref):
        i, j, k = pl.program_id(0), pl.program_id(1), pl.program_id(2)

        @pl.when((i == 0) & (j == 0) & (k == 0))
        def _():
            loss_ref[...] = jnp.zeros_like(loss_ref)

        @pl.when(k == 0)
        def _():
            acc_ref[...] = jnp.zeros_like(acc_ref)

        acc_ref[...] += jax.lax.dot_general(
            fi_ref[...], fj_ref[...],
            dimension_numbers=(((1,), (1,)), ((), ())),
            preferred_element_type=jnp.float32,
        )

        @pl.when(k == pl.num_programs(2) - 1)
        def _():
            d = acc_ref[...] * gram_scale - tgt_ref[...]
            loss_ref[...] += jnp.sum(d * d, keepdims=True) * mse_scale

    loss = pl.pallas_call(
        kernel,
        out_shape=jax.ShapeDtypeStruct((1, 1), jnp.float32),
        grid_spec=pltpu.PrefetchScalarGridSpec(
            num_scalar_prefetch=0,
            grid=grid,
            in_specs=[
                pl.BlockSpec((tm, tk), lambda i, j, k: (i, k)),
                pl.BlockSpec((tn, tk), lambda i, j, k: (j, k)),
                pl.BlockSpec((tm, tn), lambda i, j, k: (i, j)),
            ],
            # Resident (1,1) accumulator output: block index never changes.
            out_specs=pl.BlockSpec((1, 1), lambda i, j, k: (0, 0)),
            scratch_shapes=[pltpu.VMEM((tm, tn), jnp.float32)],
        ),
        compiler_params=pltpu.CompilerParams(
            # Loss accumulates across every (i, j, k) step -> keep all axes
            # "arbitrary" so one core owns the running sum (parallel would race).
            dimension_semantics=("arbitrary", "arbitrary", "arbitrary"),
        ),
    )(f, f, target_gram)
    return loss[0, 0]


class StyleLoss:
    """Pallas port of the PyTorch StyleLoss module: forward returns its input
    unchanged and stores the scalar style loss in `self.loss`."""

    def __init__(self, target_feature: jax.Array):
        # TODO(synk): .detach() is autograd bookkeeping; only the forward math is ported.
        self.target = gram_matrix(target_feature)

    def __call__(self, input_data: jax.Array) -> jax.Array:
        self.loss = style_mse_loss(input_data, self.target)
        return input_data


if __name__ == "__main__":
    key = jax.random.PRNGKey(0)
    k1, k2 = jax.random.split(key)
    # NCHW feature maps, small shapes consistent with the module.
    target_feature = jax.random.uniform(k1, (2, 4, 16, 16), dtype=jnp.float32)
    input_feature = jax.random.uniform(k2, (2, 4, 16, 16), dtype=jnp.float32)

    module = StyleLoss(target_feature)
    out = module(input_feature)
    out = jax.block_until_ready(out)
    loss = jax.block_until_ready(module.loss)

    # Plain-JAX reference mirroring the PyTorch math.
    def ref_gram(t):
        b, c, h, w = t.shape
        fr = t.reshape(b * c, h * w)
        return (fr @ fr.T) / (b * c * h * w)

    ref_target = ref_gram(target_feature)
    ref_loss = jnp.mean((ref_gram(input_feature) - ref_target) ** 2)

    assert out.shape == input_feature.shape and out.dtype == input_feature.dtype
    assert jnp.allclose(out, input_feature)  # forward passes the data through unchanged
    assert jnp.allclose(module.target, ref_target, rtol=1e-5, atol=1e-6)
    assert jnp.allclose(loss, ref_loss, rtol=1e-4, atol=1e-9)

    print("KERNEL_OK")
</pallas_src>

<mosaic_0001>
module attributes {stable_mosaic.version = 11 : i64} {
  func.func @kernel(%arg0: i32, %arg1: i32, %arg2: i32, %arg3: memref<8x256xf32, #tpu.memory_space<vmem>>, %arg4: memref<8x256xf32, #tpu.memory_space<vmem>>, %arg5: memref<8x8xf32, #tpu.memory_space<vmem>>, %arg6: memref<8x8xf32, #tpu.memory_space<vmem>>) attributes {dimension_semantics = [#tpu.dimension_semantics<parallel>, #tpu.dimension_semantics<parallel>, #tpu.dimension_semantics<arbitrary>], iteration_bounds = array<i64: 1, 1, 1>, scalar_prefetch = 0 : i64, scratch_operands = 1 : i64, tpu.core_type = #tpu.core_type<tc>, window_params = [{transform_indices = @transform_0, window_bounds = array<i64: 8, 256>}, {transform_indices = @transform_1, window_bounds = array<i64: 8, 256>}, {transform_indices = @transform_2, window_bounds = array<i64: 8, 8>}]} {
    %c0_i32 = arith.constant 0 : i32
    %0 = arith.cmpi eq, %arg2, %c0_i32 : i32
    %1 = arith.extui %0 : i1 to i32
    %c0_i32_0 = arith.constant 0 : i32
    %2 = arith.cmpi ne, %1, %c0_i32_0 : i32
    scf.if %2 {
      %cst_10 = arith.constant 0.000000e+00 : f32
      %12 = vector.broadcast %cst_10 : f32 to vector<8x8xf32>
      %c0_11 = arith.constant 0 : index
      %c0_12 = arith.constant 0 : index
      %13 = vector.load %arg6[%c0_11, %c0_12] : memref<8x8xf32, #tpu.memory_space<vmem>>, vector<8x8xf32>
      tpu.vector_store %arg6[%c0_11, %c0_12], %12 {strides = array<i32>} : memref<8x8xf32, #tpu.memory_space<vmem>>, vector<8x8xf32>,
    } else {
    }
    %c0 = arith.constant 0 : index
    %c0_1 = arith.constant 0 : index
    %3 = vector.load %arg6[%c0, %c0_1] : memref<8x8xf32, #tpu.memory_space<vmem>>, vector<8x8xf32>
    %c0_2 = arith.constant 0 : index
    %c0_3 = arith.constant 0 : index
    %4 = vector.load %arg3[%c0_2, %c0_3] : memref<8x256xf32, #tpu.memory_space<vmem>>, vector<8x256xf32>
    %c0_4 = arith.constant 0 : index
    %c0_5 = arith.constant 0 : index
    %5 = vector.load %arg4[%c0_4, %c0_5] : memref<8x256xf32, #tpu.memory_space<vmem>>, vector<8x256xf32>
    %cst = arith.constant dense<0.000000e+00> : vector<8x8xf32>
    %6 = tpu.matmul %4, %5, %cst {dimension_numbers = #tpu.dot_dimension_numbers<[1], [1], [0], [0], [0, 0, 1, 0], [], []>} : vector<8x256xf32>, vector<8x256xf32>, vector<8x8xf32> -> vector<8x8xf32>
    %7 = arith.addf %3, %6 : vector<8x8xf32>
    %c0_6 = arith.constant 0 : index
    %c0_7 = arith.constant 0 : index
    %8 = vector.load %arg6[%c0_6, %c0_7] : memref<8x8xf32, #tpu.memory_space<vmem>>, vector<8x8xf32>
    tpu.vector_store %arg6[%c0_6, %c0_7], %7 {strides = array<i32>} : memref<8x8xf32, #tpu.memory_space<vmem>>, vector<8x8xf32>,
    %c0_i32_8 = arith.constant 0 : i32
    %9 = arith.cmpi eq, %arg2, %c0_i32_8 : i32
    %10 = arith.extui %9 : i1 to i32
    %c0_i32_9 = arith.constant 0 : i32
    %11 = arith.cmpi ne, %10, %c0_i32_9 : i32
    scf.if %11 {
      %c0_10 = arith.constant 0 : index
      %c0_11 = arith.constant 0 : index
      %12 = vector.load %arg6[%c0_10, %c0_11] : memref<8x8xf32, #tpu.memory_space<vmem>>, vector<8x8xf32>
      %cst_12 = arith.constant 4.8828125E-4 : f32
      %13 = vector.broadcast %cst_12 : f32 to vector<8x8xf32>
      %14 = arith.mulf %12, %13 : vector<8x8xf32>
      %c0_13 = arith.constant 0 : index
      %c0_14 = arith.constant 0 : index
      %15 = vector.load %arg5[%c0_13, %c0_14] : memref<8x8xf32, #tpu.memory_space<vmem>>, vector<8x8xf32>
      tpu.vector_store %arg5[%c0_13, %c0_14], %14 {strides = array<i32>} : memref<8x8xf32, #tpu.memory_space<vmem>>, vector<8x8xf32>,
    } else {
    }
    return
  }
  func.func @transform_0(%arg0: i32, %arg1: i32, %arg2: i32) -> (i32, i32) {
    %c0_i32 = arith.constant 0 : i32
    return %arg0, %arg2 : i32, i32
  }
  func.func @transform_1(%arg0: i32, %arg1: i32, %arg2: i32) -> (i32, i32) {
    %c0_i32 = arith.constant 0 : i32
    return %arg1, %arg2 : i32, i32
  }
  func.func @transform_2(%arg0: i32, %arg1: i32, %arg2: i32) -> (i32, i32) {
    %c0_i32 = arith.constant 0 : i32
    return %arg0, %arg1 : i32, i32
  }
}

</mosaic_0001>

<bundles_post_ra>
// kernel: tpu_custom_call.1
= control target key start
LH: loop header
LB: loop body
LE: loop exit
PB: predicated region body
PF: predicated region fallthrough
CT: control target
= control target key end

     0   :  { %7 = vsyncpa [#allocation4], 0  ;;  %s243_s0 = inlined_call_operand.hbm [shape: f32[8,256], index: 0, kind: input, shape index: {}]   ;;  %s244_s1 = inlined_call_operand.hbm [shape: f32[8,256], index: 1, kind: input, shape index: {}]   ;;  %s245_s2 = inlined_call_operand.hbm [shape: f32[8,8], index: 2, kind: output, shape index: {}]  }
   0x1   :  { %8 = vsyncpa [#allocation7], 0 }
   0x2   :  { %9 = vsyncpa [#allocation5], 0  ;;  %s212_s9 = smov [#allocation3]   ;;  %s213_s11 = smov [#allocation6]  }
   0x3   :  { %s16_s10 = sshll.u32 %s212_s9, 4  ;;  %s26_s12 = sshll.u32 %s213_s11, 4  ;;  %s17_s10 = int_to_ptr.vmem [resolvable:$true] %s16_s10  ;;  %s27_s12 = int_to_ptr.vmem [resolvable:$true] %s26_s12 }
   0x4   :  { %s154_s13 = scalar_lea.vmem %s17_s10, 256  ;;  %p159_p1 = scmp.lt.s32.totalorder %s17_s10, %s17_s10 }
   0x5   :  { %p155_p0 = scmp.ne.s32.totalorder %s17_s10, %s154_s13  ;;  %p160_p2 = scmp.lt.s32.totalorder %s154_s13, %s154_s13 }
   0x7   :  { %p161_p3 = por %p160_p2, %p159_p1 }
   0x9   :  { %p162_p4 = pnand %p161_p3, %p155_p0 }
   0xb   :  { %165 = shalt.err (!%p162_p4)
}
   0xc   :  { %19 = dma.hbm_to_vmem [thread:$0]  %s243_s0, 256, %s17_s10, [#allocation4]  }
   0xd   :  { %s174_s16 = scalar_lea.vmem %s27_s12, 256  ;;  %p179_p6 = scmp.lt.s32.totalorder %s27_s12, %s27_s12 }
   0xe   :  { %p175_p5 = scmp.ne.s32.totalorder %s27_s12, %s174_s16  ;;  %p180_p7 = scmp.lt.s32.totalorder %s174_s16, %s174_s16 }
  0x10   :  { %p181_p8 = por %p180_p7, %p179_p6 }
  0x12   :  { %p182_p9 = pnand %p181_p8, %p175_p5 }
  0x14   :  { %185 = shalt.err (!%p182_p9)
}
  0x15   :  { %29 = dma.hbm_to_vmem [thread:$0]  %s244_s1, 256, %s27_s12, [#allocation7]  }
  0x16   :  { %206 = dma.done.wait [#allocation4], 256  }
  0x17   :  { %207 = vsyncadd [#allocation4], 4294967040 }
  0x18   :  { %208 = dma.done.wait [#allocation7], 256  }
  0x19   :  { %209 = vsyncadd [#allocation7], 4294967040  ;;  %vm40_vm0 = vcmask 64512   ;;  %v214_v0 = vmov 0.0   ;;  %v46_v1 = vld [vmem:[#allocation6 + $0x8] sm:$0xff]  ;;  %v45_v2 = vld [vmem:[#allocation6] sm:$0xff] }
  0x1a   :  { %41 = vst.msk [vmem:[#allocation2] sm:$0xff] %vm40_vm0, %v214_v0  ;;  %v44_v3 = vld [vmem:[#allocation3 + $0x8] sm:$0xff]  ;;  %77 = vmatprep.subr.mxu0 %v46_v1  ;;  %v43_v4 = vld [vmem:[#allocation3] sm:$0xff]  ;;  %s215_s0 = smov [#allocation8]  }
  0x1b   :  { %111 = vmatprep.mubr.f32.mxu0 %v44_v3  ;;  %78 = vmatpush1.xpose.msra.mxu0 %v45_v2  ;;  %s132_s1 = sshll.u32 %s215_s0, 4  ;;  %s133_s1 = int_to_ptr.vmem [resolvable:$true] %s132_s1 }
  0x1c   :  { %s186_s19 = scalar_lea.vmem %s133_s1, 128  ;;  %p191_p11 = scmp.lt.s32.totalorder %s133_s1, %s133_s1 }
  0x1d   :  { %p187_p10 = scmp.ne.s32.totalorder %s133_s1, %s186_s19  ;;  %p192_p12 = scmp.lt.s32.totalorder %s186_s19, %s186_s19 }
  0x1e   :  { %112 = vmatmul.mubr.f32.vlgmr.msra.gmra.mxu0 %v43_v4 }
  0x1f   :  { %p193_p13 = por %p192_p12, %p191_p11 }
  0x21   :  { %v42_v5 = vld [vmem:[#allocation2] sm:$0xff]  ;;  %p194_p0 = pnand %p193_p13, %p187_p10 }
  0xde   :  { %v113_v6 = vpop.f32.mrf.mxu0 }
  0xdf   :  { %v117_v7 = vadd.f32 %v113_v6, %v42_v5 }
  0xe0   :  { %v115_v8 = vpop.f32.mrf.mxu0 }
  0xe1   :  { %119 = vst.msk [vmem:[#allocation2] sm:$0xff] %vm40_vm0, %v117_v7 }
  0xe8   :  { %v123_v9 = vld [vmem:[#allocation2] sm:$0xff] }
  0xe9   :  { %v124_v10 = vmul.f32 0.00048828125, %v123_v9 }
  0xeb   :  { %125 = vst.msk [vmem:[#allocation8] sm:$0xff] %vm40_vm0, %v124_v10 }
  0xec   :  { %197 = shalt.err (!%p194_p0)
}
  0xed   :  { %135 = dma.vmem_to_hbm [thread:$0]  %s133_s1, 128, %s245_s2, [#allocation5]  }
  0xee   :  { %210 = dma.done.wait [#allocation5], 128  }
  0xef   :  { %211 = vsyncadd [#allocation5], 4294967168 }
  0xf0   :  { %139 = vsyncpa [#allocation4], 1 }
  0xf1   :  { %140 = vsyncpa [#allocation7], 1 }
  0xf2   :  { %141 = vsyncpa [#allocation5], 1 }

</bundles_post_ra>
